<compile_context>
chip_gen: v6e
topology: v6e:2x2x1
jax: 0.10.0
libtpu: 0.0.40
codegen_flags: <defaults>
</compile_context>

<pallas_src>
import functools

import jax
import jax.numpy as jnp
from jax.experimental import pallas as pl
from jax.experimental.pallas import tpu as pltpu

LANE = 128


def _round_up(x, m):
    return (x + m - 1) // m * m


def _pad2(a, rows, cols):
    return jnp.pad(a, ((0, rows - a.shape[0]), (0, cols - a.shape[1])))


def _pick_tile(n_pad, max_tile=1024):
    """Largest 128-aligned tile dividing n_pad, capped at max_tile; prefer >=2 row blocks."""
    candidates = [t for t in range(LANE, min(n_pad, max_tile) + 1, LANE) if n_pad % t == 0]
    if not candidates:
        return LANE
    pref = [t for t in candidates if n_pad // t >= 2]
    return max(pref) if pref else max(candidates)


def _vmem_limit(tm, tk, n_pad, h2_pad, o_pad):
    """Explicit scoped-VMEM budget: double-buffered A stream + resident slabs + headroom."""
    a_stream = 2 * tm * tk * 2                                  # bf16 A tile, double buffer
    resident = 2 * n_pad * h2_pad * 2 + 2 * n_pad * o_pad * 2   # z1 / z2 resident (2 bufs)
    resident += 2 * tm * o_pad * 2                              # m row band (bf16)
    work = tm * h2_pad * 4 + 2 * tm * o_pad * 4 + h2_pad * o_pad * 4
    est = a_stream + resident + work + (4 << 20)
    return int(min(max(est, 32 << 20), 64 << 20))               # fits v7x's 64 MiB physical


# --------------------- kernel 1: per-node pointwise pre-pass ---------------------
# Trace-time fused weights (stem Linear collapsed):
#   z1 = x @ (wl@wc1) + (bl@wc1)                      (conv-path input features)
#   m  = x @ (wl@wm1@wm2) + ((bl@wm1 + bm1)@wm2+bm2)  (entire MLP branch, dropout=0)
def prepass_kernel(x_ref, wz1_ref, bz1_ref, wm_ref, bm_ref, z1_ref, m_ref):
    x = x_ref[...]                                   # bf16
    z1 = jnp.dot(x, wz1_ref[...], preferred_element_type=jnp.float32) + bz1_ref[...]
    m = jnp.dot(x, wm_ref[...], preferred_element_type=jnp.float32) + bm_ref[...]
    z1_ref[...] = z1.astype(z1_ref.dtype)            # bf16 for the A-propagation stream
    m_ref[...] = m.astype(m_ref.dtype)               # bf16 MLP branch


# --------------------- kernel 2: conv layer 1 propagation ------------------------
# acc += A[i,k] @ z1[k];  on last k:  h1 = relu(acc + bc1);  z2 = h1 @ wc2
# z1 is VMEM-resident (full-extent block); slice the k-tile in-kernel.
def conv1_kernel(a_ref, z1_ref, bc1_ref, wc2_ref, z2_ref, acc_ref, *, tk):
    k = pl.program_id(1)

    @pl.when(k == 0)
    def _():
        acc_ref[...] = jnp.zeros_like(acc_ref)

    k0 = pl.multiple_of(k * tk, tk)
    acc_ref[...] += jnp.dot(a_ref[...], z1_ref[pl.ds(k0, tk), :],
                            preferred_element_type=jnp.float32)

    @pl.when(k == pl.num_programs(1) - 1)
    def _():
        h1 = jnp.maximum(acc_ref[...] + bc1_ref[...], 0.0)
        z2 = jnp.dot(h1.astype(wc2_ref.dtype), wc2_ref[...],
                     preferred_element_type=jnp.float32)
        z2_ref[...] = z2.astype(z2_ref.dtype)


# --------------------- kernel 3: conv layer 2 propagation + epilogue -------------
# acc += A[i,k] @ z2[k];  on last k:  out = relu(acc + bc2) + m[i]
# z2 is VMEM-resident; m is a per-row-band bf16 block (read once total).
def conv2_kernel(a_ref, z2_ref, bc2_ref, m_ref, out_ref, acc_ref, *, tk):
    k = pl.program_id(1)

    @pl.when(k == 0)
    def _():
        acc_ref[...] = jnp.zeros_like(acc_ref)

    k0 = pl.multiple_of(k * tk, tk)
    acc_ref[...] += jnp.dot(a_ref[...], z2_ref[pl.ds(k0, tk), :],
                            preferred_element_type=jnp.float32)

    @pl.when(k == pl.num_programs(1) - 1)
    def _():
        out_ref[...] = (jnp.maximum(acc_ref[...] + bc2_ref[...], 0.0)
                        + m_ref[...].astype(jnp.float32))


# ------------------------------- plain-JAX glue -----------------------------------
def build_gcn_adjacency_padded(edge_index, edge_weight, num_nodes, n_pad,
                               out_dtype=jnp.bfloat16):
    """Dense GCN-normalized adjacency (self-loops, symmetric norm), built lean:
    one scatter-add into a padded f32 buffer, one row-sum, one fused scale+cast pass."""
    row, col = edge_index[0], edge_index[1]          # source, target
    if edge_weight is None:
        edge_weight = jnp.ones(row.shape[0], dtype=jnp.float32)
    diag = jnp.arange(num_nodes, dtype=edge_index.dtype)
    dst = jnp.concatenate([col, diag])
    src = jnp.concatenate([row, diag])
    w = jnp.concatenate([edge_weight.astype(jnp.float32),
                         jnp.ones(num_nodes, jnp.float32)])
    a = jnp.zeros((n_pad, n_pad), jnp.float32).at[dst, src].add(w)
    deg = a.sum(axis=1)
    d = jnp.where(deg > 0, jax.lax.rsqrt(deg), 0.0)
    # Padded rows/cols have deg 0 -> d = 0 -> normalized entries 0.
    return (d[:, None] * a * d[None, :]).astype(out_dtype)


def tss_node_regressor_forward(x, edge_index, params, edge_feature=None,
                               edge_feature_dim=None, *, max_tile=1024):
    N, F = x.shape
    (wl, bl, wc1, bc1, wc2, bc2, wm1, bm1, wm2, bm2) = params
    H2 = wc1.shape[1]
    O = wc2.shape[1]

    # --- trace-time weight fusion (stem Linear + whole MLP branch collapse) ---
    wz1 = wl @ wc1                        # [F, H2]
    bz1 = bl @ wc1                        # [1, H2]
    wm = wl @ wm1 @ wm2                   # [F, O]
    bm = (bl @ wm1 + bm1) @ wm2 + bm2     # [1, O]

    # --- edge weights / dense normalized adjacency (built directly padded, bf16) ---
    edge_weight = None
    if edge_feature is not None:
        edge_weight = edge_feature if edge_feature_dim == 1 else edge_feature.mean(axis=1)

    # --- padding: lane-dense feature dims (128); node dim padded to 128, tile divides it ---
    n_pad = _round_up(N, LANE)
    f_pad = _round_up(F, LANE)
    h2_pad = _round_up(H2, LANE)
    o_pad = _round_up(O, LANE)
    tm = tk = _pick_tile(n_pad, max_tile)
    n_i = n_pad // tm
    n_k = n_pad // tk

    a_p = build_gcn_adjacency_padded(edge_index, edge_weight, N, n_pad,
                                     out_dtype=jnp.bfloat16)

    x_p = _pad2(x, n_pad, f_pad).astype(jnp.bfloat16)
    wz1_p = _pad2(wz1, f_pad, h2_pad).astype(jnp.bfloat16)
    bz1_p = _pad2(bz1, 1, h2_pad)
    wm_p = _pad2(wm, f_pad, o_pad).astype(jnp.bfloat16)
    bm_p = _pad2(bm, 1, o_pad)
    bc1_p = _pad2(bc1, 1, h2_pad)
    wc2_p = _pad2(wc2, h2_pad, o_pad).astype(jnp.bfloat16)
    bc2_p = _pad2(bc2, 1, o_pad)

    vmem_limit = _vmem_limit(tm, tk, n_pad, h2_pad, o_pad)

    # ---------- pre-pass: per-node features for both branches (bf16 matmuls, f32 acc) ----
    z1_bf16, m_bf16 = pl.pallas_call(
        prepass_kernel,
        grid=(n_i,),
        in_specs=[
            pl.BlockSpec((tm, f_pad), lambda i: (i, 0)),
            pl.BlockSpec((f_pad, h2_pad), lambda i: (0, 0)),
            pl.BlockSpec((1, h2_pad), lambda i: (0, 0)),
            pl.BlockSpec((f_pad, o_pad), lambda i: (0, 0)),
            pl.BlockSpec((1, o_pad), lambda i: (0, 0)),
        ],
        out_specs=[
            pl.BlockSpec((tm, h2_pad), lambda i: (i, 0)),
            pl.BlockSpec((tm, o_pad), lambda i: (i, 0)),
        ],
        out_shape=[
            jax.ShapeDtypeStruct((n_pad, h2_pad), jnp.bfloat16),
            jax.ShapeDtypeStruct((n_pad, o_pad), jnp.bfloat16),
        ],
        compiler_params=pltpu.CompilerParams(
            dimension_semantics=("parallel",),
            vmem_limit_bytes=vmem_limit),
    )(x_p, wz1_p, bz1_p, wm_p, bm_p)

    # ---------- conv layer 1: h1 = relu(A @ z1 + bc1); z2 = h1 @ wc2 ----------
    z2_bf16 = pl.pallas_call(
        functools.partial(conv1_kernel, tk=tk),
        grid=(n_i, n_k),
        in_specs=[
            pl.BlockSpec((tm, tk), lambda i, k: (i, k)),           # A_hat tile stream
            pl.BlockSpec((n_pad, h2_pad), lambda i, k: (0, 0)),    # z1 (VMEM-resident)
            pl.BlockSpec((1, h2_pad), lambda i, k: (0, 0)),        # bc1 (resident)
            pl.BlockSpec((h2_pad, o_pad), lambda i, k: (0, 0)),    # wc2 (resident)
        ],
        out_specs=pl.BlockSpec((tm, o_pad), lambda i, k: (i, 0)),
        out_shape=jax.ShapeDtypeStruct((n_pad, o_pad), jnp.bfloat16),
        scratch_shapes=[pltpu.VMEM((tm, h2_pad), jnp.float32)],
        compiler_params=pltpu.CompilerParams(
            dimension_semantics=("parallel", "arbitrary"),
            vmem_limit_bytes=vmem_limit),
    )(a_p, z1_bf16, bc1_p, wc2_p)

    # ---------- conv layer 2: out = relu(A @ z2 + bc2) + m ----------
    out_p = pl.pallas_call(
        functools.partial(conv2_kernel, tk=tk),
        grid=(n_i, n_k),
        in_specs=[
            pl.BlockSpec((tm, tk), lambda i, k: (i, k)),           # A_hat tile stream
            pl.BlockSpec((n_pad, o_pad), lambda i, k: (0, 0)),     # z2 (VMEM-resident)
            pl.BlockSpec((1, o_pad), lambda i, k: (0, 0)),         # bc2 (resident)
            pl.BlockSpec((tm, o_pad), lambda i, k: (i, 0)),        # MLP branch m (per row band)
        ],
        out_specs=pl.BlockSpec((tm, o_pad), lambda i, k: (i, 0)),
        out_shape=jax.ShapeDtypeStruct((n_pad, o_pad), jnp.float32),
        scratch_shapes=[pltpu.VMEM((tm, o_pad), jnp.float32)],
        compiler_params=pltpu.CompilerParams(
            dimension_semantics=("parallel", "arbitrary"),
            vmem_limit_bytes=vmem_limit),
    )(a_p, z2_bf16, bc2_p, m_bf16)

    out = out_p[:N, :O]
    return out[:, 0] if O == 1 else out      # x.squeeze(1) with output_dim == 1


def init_params(key, input_dim, hidden_dim, output_dim):
    """Deterministic synthetic parameters. Weights stored as [in, out]; biases as [1, out]."""
    ks = jax.random.split(key, 10)
    h2 = hidden_dim // 2

    def w(k, i, o):
        return jax.random.normal(k, (i, o), jnp.float32) / jnp.sqrt(jnp.float32(i))

    def b(k, o):
        return jax.random.normal(k, (1, o), jnp.float32) * 0.01

    wl,  bl  = w(ks[0], input_dim, hidden_dim), b(ks[1], hidden_dim)
    wc1, bc1 = w(ks[2], hidden_dim, h2),        b(ks[3], h2)
    wc2, bc2 = w(ks[4], h2, output_dim),        b(ks[5], output_dim)
    wm1, bm1 = w(ks[6], hidden_dim, h2),        b(ks[7], h2)
    wm2, bm2 = w(ks[8], h2, output_dim),        b(ks[9], output_dim)
    return (wl, bl, wc1, bc1, wc2, bc2, wm1, bm1, wm2, bm2)


def reference_forward(x, edge_index, params, edge_feature=None, edge_feature_dim=None):
    """Pure-JAX f32 reference for correctness checking."""
    edge_weight = None
    if edge_feature is not None:
        edge_weight = edge_feature if edge_feature_dim == 1 else edge_feature.mean(axis=1)
    a_hat = build_gcn_adjacency_padded(edge_index, edge_weight, x.shape[0], x.shape[0],
                                       out_dtype=jnp.float32)
    (wl, bl, wc1, bc1, wc2, bc2, wm1, bm1, wm2, bm2) = params
    xl = x @ wl + bl
    h = jnp.maximum(a_hat @ (xl @ wc1) + bc1, 0.0)
    h = jnp.maximum(a_hat @ (h @ wc2) + bc2, 0.0)
    m = (xl @ wm1 + bm1) @ wm2 + bm2
    return (h + m)[:, 0]


if __name__ == "__main__":
    key = jax.random.PRNGKey(0)
    k_x, k_e, k_p = jax.random.split(key, 3)

    N, INPUT_DIM, HIDDEN_DIM, OUTPUT_DIM = 16, 8, 32, 1
    NUM_EDGES = 40

    x = jax.random.normal(k_x, (N, INPUT_DIM), jnp.float32)
    edge_index = jax.random.randint(k_e, (2, NUM_EDGES), 0, N, dtype=jnp.int32)
    params = init_params(k_p, INPUT_DIM, HIDDEN_DIM, OUTPUT_DIM)

    out = tss_node_regressor_forward(x, edge_index, params, edge_feature=None)
    out = jax.block_until_ready(out)

    ref = reference_forward(x, edge_index, params)
    assert out.shape == (N,)
    # bf16 adjacency / activation / MLP streams with f32 accumulation -> loose tolerance.
    assert jnp.allclose(out, ref, atol=5e-2, rtol=5e-2), \
        f"max abs err = {jnp.max(jnp.abs(out - ref))}"

    print("KERNEL_OK")
</pallas_src>

<mosaic_0001>
module attributes {stable_mosaic.version = 11 : i64} {
  func.func @prepass_kernel(%arg0: i32, %arg1: memref<128x128xbf16, #tpu.memory_space<vmem>>, %arg2: memref<128x128xbf16, #tpu.memory_space<vmem>>, %arg3: memref<1x128xf32, #tpu.memory_space<vmem>>, %arg4: memref<128x128xbf16, #tpu.memory_space<vmem>>, %arg5: memref<1x128xf32, #tpu.memory_space<vmem>>, %arg6: memref<128x128xbf16, #tpu.memory_space<vmem>>, %arg7: memref<128x128xbf16, #tpu.memory_space<vmem>>) attributes {dimension_semantics = [#tpu.dimension_semantics<parallel>], iteration_bounds = array<i64: 1>, scalar_prefetch = 0 : i64, scratch_operands = 0 : i64, tpu.core_type = #tpu.core_type<tc>, window_params = [{transform_indices = @transform_0, window_bounds = array<i64: 128, 128>}, {pipeline_mode = #tpu.pipeline_mode<synchronous>, transform_indices = @transform_1, window_bounds = array<i64: 128, 128>}, {pipeline_mode = #tpu.pipeline_mode<synchronous>, transform_indices = @transform_2, window_bounds = array<i64: 1, 128>}, {pipeline_mode = #tpu.pipeline_mode<synchronous>, transform_indices = @transform_3, window_bounds = array<i64: 128, 128>}, {pipeline_mode = #tpu.pipeline_mode<synchronous>, transform_indices = @transform_4, window_bounds = array<i64: 1, 128>}, {transform_indices = @transform_5, window_bounds = array<i64: 128, 128>}, {transform_indices = @transform_6, window_bounds = array<i64: 128, 128>}]} {
    %c0 = arith.constant 0 : index
    %c0_0 = arith.constant 0 : index
    %0 = vector.load %arg1[%c0, %c0_0] : memref<128x128xbf16, #tpu.memory_space<vmem>>, vector<128x128xbf16>
    %c0_1 = arith.constant 0 : index
    %c0_2 = arith.constant 0 : index
    %1 = vector.load %arg2[%c0_1, %c0_2] : memref<128x128xbf16, #tpu.memory_space<vmem>>, vector<128x128xbf16>
    %cst = arith.constant dense<0.000000e+00> : vector<128x128xf32>
    %2 = tpu.matmul %0, %1, %cst {dimension_numbers = #tpu.dot_dimension_numbers<[1], [0], [0], [1], [0, 0, 1, 1], [], []>} : vector<128x128xbf16>, vector<128x128xbf16>, vector<128x128xf32> -> vector<128x128xf32>
    %c0_3 = arith.constant 0 : index
    %c0_4 = arith.constant 0 : index
    %3 = vector.load %arg3[%c0_3, %c0_4] : memref<1x128xf32, #tpu.memory_space<vmem>>, vector<1x128xf32>
    %4 = vector.broadcast %3 : vector<1x128xf32> to vector<128x128xf32>
    %5 = arith.addf %2, %4 : vector<128x128xf32>
    %c0_5 = arith.constant 0 : index
    %c0_6 = arith.constant 0 : index
    %6 = vector.load %arg4[%c0_5, %c0_6] : memref<128x128xbf16, #tpu.memory_space<vmem>>, vector<128x128xbf16>
    %cst_7 = arith.constant dense<0.000000e+00> : vector<128x128xf32>
    %7 = tpu.matmul %0, %6, %cst_7 {dimension_numbers = #tpu.dot_dimension_numbers<[1], [0], [0], [1], [0, 0, 1, 1], [], []>} : vector<128x128xbf16>, vector<128x128xbf16>, vector<128x128xf32> -> vector<128x128xf32>
    %c0_8 = arith.constant 0 : index
    %c0_9 = arith.constant 0 : index
    %8 = vector.load %arg5[%c0_8, %c0_9] : memref<1x128xf32, #tpu.memory_space<vmem>>, vector<1x128xf32>
    %9 = vector.broadcast %8 : vector<1x128xf32> to vector<128x128xf32>
    %10 = arith.addf %7, %9 : vector<128x128xf32>
    %11 = arith.truncf %5 : vector<128x128xf32> to vector<128x128xbf16>
    %c0_10 = arith.constant 0 : index
    %c0_11 = arith.constant 0 : index
    %12 = vector.load %arg6[%c0_10, %c0_11] : memref<128x128xbf16, #tpu.memory_space<vmem>>, vector<128x128xbf16>
    tpu.vector_store %arg6[%c0_10, %c0_11], %11 {strides = array<i32>} : memref<128x128xbf16, #tpu.memory_space<vmem>>, vector<128x128xbf16>,
    %13 = arith.truncf %10 : vector<128x128xf32> to vector<128x128xbf16>
    %c0_12 = arith.constant 0 : index
    %c0_13 = arith.constant 0 : index
    %14 = vector.load %arg7[%c0_12, %c0_13] : memref<128x128xbf16, #tpu.memory_space<vmem>>, vector<128x128xbf16>
    tpu.vector_store %arg7[%c0_12, %c0_13], %13 {strides = array<i32>} : memref<128x128xbf16, #tpu.memory_space<vmem>>, vector<128x128xbf16>,
    return
  }
  func.func @transform_0(%arg0: i32) -> (i32, i32) {
    %c0_i32 = arith.constant 0 : i32
    %c0_i32_0 = arith.constant 0 : i32
    return %arg0, %c0_i32 : i32, i32
  }
  func.func @transform_1(%arg0: i32) -> (i32, i32) {
    %c0_i32 = arith.constant 0 : i32
    %c0_i32_0 = arith.constant 0 : i32
    %c0_i32_1 = arith.constant 0 : i32
    return %c0_i32, %c0_i32_0 : i32, i32
  }
  func.func @transform_2(%arg0: i32) -> (i32, i32) {
    %c0_i32 = arith.constant 0 : i32
    %c0_i32_0 = arith.constant 0 : i32
    %c0_i32_1 = arith.constant 0 : i32
    return %c0_i32, %c0_i32_0 : i32, i32
  }
  func.func @transform_3(%arg0: i32) -> (i32, i32) {
    %c0_i32 = arith.constant 0 : i32
    %c0_i32_0 = arith.constant 0 : i32
    %c0_i32_1 = arith.constant 0 : i32
    return %c0_i32, %c0_i32_0 : i32, i32
  }
  func.func @transform_4(%arg0: i32) -> (i32, i32) {
    %c0_i32 = arith.constant 0 : i32
    %c0_i32_0 = arith.constant 0 : i32
    %c0_i32_1 = arith.constant 0 : i32
    return %c0_i32, %c0_i32_0 : i32, i32
  }
  func.func @transform_5(%arg0: i32) -> (i32, i32) {
    %c0_i32 = arith.constant 0 : i32
    %c0_i32_0 = arith.constant 0 : i32
    return %arg0, %c0_i32 : i32, i32
  }
  func.func @transform_6(%arg0: i32) -> (i32, i32) {
    %c0_i32 = arith.constant 0 : i32
    %c0_i32_0 = arith.constant 0 : i32
    return %arg0, %c0_i32 : i32, i32
  }
}

</mosaic_0001>

<bundles_post_ra>
// kernel: tpu_custom_call.1
= control target key start
LH: loop header
LB: loop body
LE: loop exit
PB: predicated region body
PF: predicated region fallthrough
CT: control target
= control target key end

     0   :  { %12 = vsyncpa [#allocation3], 0  ;;  %s1193_s0 = inlined_call_operand.hbm [shape: bf16[128,128], index: 0, kind: input, shape index: {}]   ;;  %s1194_s1 = inlined_call_operand.hbm [shape: bf16[128,128], index: 1, kind: input, shape index: {}]   ;;  %s1195_s2 = inlined_call_operand.vmem [shape: f32[1,128], index: 2, kind: input, shape index: {}]   ;;  %s1196_s3 = inlined_call_operand.hbm [shape: bf16[128,128], index: 3, kind: input, shape index: {}]   ;;  %s1197_s4 = inlined_call_operand.vmem [shape: f32[1,128], index: 4, kind: input, shape index: {}]   ;;  %s1198_s5 = inlined_call_operand.hbm [shape: bf16[128,128], index: 5, kind: output, shape index: {0}]   ;;  %s1199_s6 = inlined_call_operand.hbm [shape: bf16[128,128], index: 6, kind: output, shape index: {1}]  }
   0x1   :  { %13 = vsyncpa [#allocation6], 0 }
   0x2   :  { %14 = vsyncpa [#allocation4], 0 }
   0x3   :  { %15 = vsyncpa [#allocation10], 0  ;;  %s1079_s21 = smov [#allocation5]   ;;  %s1080_s23 = smov [#allocation2]  }
   0x4   :  { %s33_s22 = sshll.u32 %s1079_s21, 4  ;;  %s21_s24 = sshll.u32 %s1080_s23, 4  ;;  %s34_s22 = int_to_ptr.vmem [resolvable:$true] %s33_s22  ;;  %s22_s24 = int_to_ptr.vmem [resolvable:$true] %s21_s24 }
   0x5   :  { %s979_s25 = scalar_lea.vmem %s34_s22, 1024  ;;  %p984_p1 = scmp.lt.s32.totalorder %s34_s22, %s34_s22 }
   0x6   :  { %p980_p0 = scmp.ne.s32.totalorder %s34_s22, %s979_s25  ;;  %p985_p2 = scmp.lt.s32.totalorder %s979_s25, %s979_s25 }
   0x8   :  { %p986_p3 = por %p985_p2, %p984_p1 }
   0xa   :  { %p987_p4 = pnand %p986_p3, %p980_p0 }
   0xc   :  { %990 = shalt.err (!%p987_p4)
}
   0xd   :  { %s1081_s26 = smov 64   ;;  %s1082_s27 = smov 4  }
   0xe   :  { %39 = dma.hbm_to_vmem [thread:$0]  %s1194_s1, 1024, %s34_s22, [#allocation6], %s1081_s26, %s1081_s26, %s1082_s27  }
   0xf   :  { %s999_s30 = scalar_lea.vmem %s22_s24, 1024  ;;  %p1004_p6 = scmp.lt.s32.totalorder %s22_s24, %s22_s24 }
  0x10   :  { %p1000_p5 = scmp.ne.s32.totalorder %s22_s24, %s999_s30  ;;  %p1005_p7 = scmp.lt.s32.totalorder %s999_s30, %s999_s30 }
  0x12   :  { %p1006_p8 = por %p1005_p7, %p1004_p6 }
  0x14   :  { %p1007_p9 = pnand %p1006_p8, %p1000_p5 }
  0x16   :  { %1010 = shalt.err (!%p1007_p9)
}
  0x17   :  { %27 = dma.hbm_to_vmem [thread:$0]  %s1193_s0, 1024, %s22_s24, [#allocation3], %s1081_s26, %s1081_s26, %s1082_s27  }
  0x18   :  { %s1083_s9 = smov [#allocation7]  }
  0x19   :  { %s47_s10 = sshll.u32 %s1083_s9, 4  ;;  %s48_s10 = int_to_ptr.vmem [resolvable:$true] %s47_s10 }
  0x1a   :  { %s1019_s11 = scalar_lea.vmem %s48_s10, 1024  ;;  %p1024_p11 = scmp.lt.s32.totalorder %s48_s10, %s48_s10 }
  0x1b   :  { %p1020_p10 = scmp.ne.s32.totalorder %s48_s10, %s1019_s11  ;;  %p1025_p12 = scmp.lt.s32.totalorder %s1019_s11, %s1019_s11 }
  0x1d   :  { %p1026_p13 = por %p1025_p12, %p1024_p11 }
  0x1f   :  { %p1027_p0 = pnand %p1026_p13, %p1020_p10 }
  0x21   :  { %1030 = shalt.err (!%p1027_p0)
}
  0x22   :  { %53 = dma.hbm_to_vmem [thread:$0]  %s1196_s3, 1024, %s48_s10, [#allocation6], %s1081_s26, %s1081_s26, %s1082_s27  }
  0x23   :  { %1071 = dma.done.wait [#allocation3], 1024  }
  0x24   :  { %1072 = vsyncadd [#allocation3], 4294966272 }
  0x25   :  { %1073 = dma.done.wait [#allocation6], 2048  }
  0x26   :  { %1074 = vsyncadd [#allocation6], 4294965248  ;;  %v947_v0 = vld [vmem:[#allocation5 + $0x38] sm:$0xff]   ;;  %v949_v2 = vld [vmem:[#allocation5 + $0x30] sm:$0xff]   ;;  %s1085_s15 = smov [#allocation9]  }
  0x27   :  { %v948_v1 = vld [vmem:[#allocation7 + $0x38] sm:$0xff]   ;;  %876 = vmatprep.subr.bf16.mxu0 %v947_v0  ;;  %v950_v3 = vld [vmem:[#allocation7 + $0x30] sm:$0xff]   ;;  %v951_v4 = vld [vmem:[#allocation5 + $0x28] sm:$0xff]   ;;  %s643_s16 = sshll.u32 %s1085_s15, 4  ;;  %s644_s16 = int_to_ptr.vmem [resolvable:$true] %s643_s16 }
  0x28   :  { %908 = vmatprep.subr.bf16.mxu1 %v948_v1  ;;  %877 = vmatpush3.bf16.msra.mxu0 %v947_v0  ;;  %v952_v5 = vld [vmem:[#allocation7 + $0x28] sm:$0xff]   ;;  %v953_v6 = vld [vmem:[#allocation5 + $0x20] sm:$0xff]   ;;  %v955_v8 = vld [vmem:[#allocation5 + $0x18] sm:$0xff]  }
  0x29   :  { %909 = vmatpush3.bf16.msra.mxu1 %v948_v1  ;;  %878 = vmatprep.subr.bf16.mxu0 %v949_v2  ;;  %v954_v7 = vld [vmem:[#allocation7 + $0x20] sm:$0xff]   ;;  %v956_v9 = vld [vmem:[#allocation7 + $0x18] sm:$0xff]   ;;  %v957_v10 = vld [vmem:[#allocation5 + $0x10] sm:$0xff]  }
  0x2a   :  { %910 = vmatprep.subr.bf16.mxu1 %v950_v3  ;;  %v963_v11 = vld [vmem:[#allocation2] sm:$0xff]   ;;  %v958_v12 = vld [vmem:[#allocation7 + $0x10] sm:$0xff]   ;;  %v959_v13 = vld [vmem:[#allocation5 + $0x8] sm:$0xff]  }
  0x2b   :  { %892 = vmatprep.mubr.bf16.mxu0 %v963_v11  ;;  %924 = vmatprep.mubr.bf16.mxu1 %v963_v11  ;;  %v960_v14 = vld [vmem:[#allocation7 + $0x8] sm:$0xff]   ;;  %v961_v15 = vld [vmem:[#allocation5] sm:$0xff]   ;;  %v965_v18 = vld [vmem:[#allocation2 + $0x10] sm:$0xff]  }
  0x2c   :  { %879 = vmatpush3.bf16.msra.mxu0 %v949_v2  ;;  %v962_v16 = vld [vmem:[#allocation7] sm:$0xff]   ;;  %v964_v17 = vld [vmem:[#allocation2 + $0x8] sm:$0xff]   ;;  %v966_v19 = vld [vmem:[#allocation2 + $0x18] sm:$0xff]  }
  0x2d   :  { %911 = vmatpush3.bf16.msra.mxu1 %v950_v3  ;;  %880 = vmatprep.subr.bf16.mxu0 %v951_v4  ;;  %v967_v20 = vld [vmem:[#allocation2 + $0x20] sm:$0xff]   ;;  %v968_v21 = vld [vmem:[#allocation2 + $0x28] sm:$0xff]   ;;  %v969_v22 = vld [vmem:[#allocation2 + $0x30] sm:$0xff]  }
  0x2e   :  { %912 = vmatprep.subr.bf16.mxu1 %v952_v5  ;;  %v970_v23 = vld [vmem:[#allocation2 + $0x38] sm:$0xff]   ;;  %v1142_v26 = vld [vmem:[%s1195_s2] ss:$0 sm:$0xff]  ;;  %s1084_s2 = smov [#allocation8]  }
  0x2f   :  { %v1147_v28 = vld [vmem:[%s1197_s4] ss:$0 sm:$0xff]  ;;  %s631_s4 = sshll.u32 %s1084_s2, 4  ;;  %s632_s4 = int_to_ptr.vmem [resolvable:$true] %s631_s4 }
  0x30   :  { %881 = vmatpush3.bf16.msra.mxu0 %v951_v4  ;;  %s1031_s17 = scalar_lea.vmem %s632_s4, 1024  ;;  %p1036_p2 = scmp.lt.s32.totalorder %s632_s4, %s632_s4 }
  0x31   :  { %913 = vmatpush3.bf16.msra.mxu1 %v952_v5  ;;  %882 = vmatprep.subr.bf16.mxu0 %v953_v6  ;;  %p1032_p1 = scmp.ne.s32.totalorder %s632_s4, %s1031_s17  ;;  %p1037_p3 = scmp.lt.s32.totalorder %s1031_s17, %s1031_s17 }
  0x32   :  { %914 = vmatprep.subr.bf16.mxu1 %v954_v7 }
  0x33   :  { %p1038_p4 = por %p1037_p3, %p1036_p2 }
  0x34   :  { %883 = vmatpush3.bf16.msra.mxu0 %v953_v6 }
  0x35   :  { %915 = vmatpush3.bf16.msra.mxu1 %v954_v7  ;;  %884 = vmatprep.subr.bf16.mxu0 %v955_v8  ;;  %p1039_p5 = pnand %p1038_p4, %p1032_p1 }
  0x36   :  { %916 = vmatprep.subr.bf16.mxu1 %v956_v9 }
  0x38   :  { %885 = vmatpush3.bf16.msra.mxu0 %v955_v8 }
  0x39   :  { %917 = vmatpush3.bf16.msra.mxu1 %v956_v9  ;;  %886 = vmatprep.subr.bf16.mxu0 %v957_v10 }
  0x3a   :  { %918 = vmatprep.subr.bf16.mxu1 %v958_v12 }
  0x3c   :  { %887 = vmatpush3.bf16.msra.mxu0 %v957_v10 }
  0x3d   :  { %919 = vmatpush3.bf16.msra.mxu1 %v958_v12  ;;  %888 = vmatprep.subr.bf16.mxu0 %v959_v13 }
  0x3e   :  { %920 = vmatprep.subr.bf16.mxu1 %v960_v14 }
  0x40   :  { %889 = vmatpush3.bf16.msra.mxu0 %v959_v13 }
  0x41   :  { %921 = vmatpush3.bf16.msra.mxu1 %v960_v14  ;;  %890 = vmatprep.subr.bf16.mxu0 %v961_v15 }
  0x42   :  { %922 = vmatprep.subr.bf16.mxu1 %v962_v16 }
  0x44   :  { %891 = vmatpush3.bf16.msra.mxu0 %v961_v15 }
  0x45   :  { %923 = vmatpush3.bf16.msra.mxu1 %v962_v16 }
  0x47   :  { %893 = vmatmul.mubr.bf16.vlgmr.msra.gmra.mxu0 %v964_v17 }
  0x48   :  { %925 = vmatmul.mubr.bf16.vlgmr.msra.gmra.mxu1 %v964_v17  ;;  %896 = vmatprep.mubr.bf16.mxu0 %v965_v18 }
  0x49   :  { %928 = vmatprep.mubr.bf16.mxu1 %v965_v18 }
  0x4f   :  { %897 = vmatmul.mubr.bf16.gmra.mxu0 %v966_v19 }
  0x50   :  { %929 = vmatmul.mubr.bf16.gmra.mxu1 %v966_v19  ;;  %900 = vmatprep.mubr.bf16.mxu0 %v967_v20 }
  0x51   :  { %932 = vmatprep.mubr.bf16.mxu1 %v967_v20 }
  0x57   :  { %901 = vmatmul.mubr.bf16.gmra.mxu0 %v968_v21 }
  0x58   :  { %933 = vmatmul.mubr.bf16.gmra.mxu1 %v968_v21  ;;  %904 = vmatprep.mubr.bf16.mxu0 %v969_v22 }
  0x59   :  { %936 = vmatprep.mubr.bf16.mxu1 %v969_v22 }
  0x5f   :  { %905 = vmatmul.mubr.bf16.gmra.mxu0 %v970_v23 }
  0x60   :  { %937 = vmatmul.mubr.bf16.gmra.mxu1 %v970_v23 }
 0x107   :  { %v894_v24 = vpop.f32.mrf.mxu0 }
 0x108   :  { %v926_v25 = vpop.f32.mrf.mxu1  ;;  %v244_v31 = vadd.f32 %v894_v24, %v1142_v26 }
 0x109   :  { %v235_v27 = vpop.f32.mrf.mxu0  ;;  %v412_v34 = vadd.f32 %v926_v25, %v1147_v28 }
 0x10a   :  { %v403_v29 = vpop.f32.mrf.mxu1  ;;  %v236_v37 = vadd.f32 %v1142_v26, %v235_v27 }
 0x10b   :  { %v895_v30 = vpop.f32.mrf.mxu0  ;;  %v404_v41 = vadd.f32 %v1147_v28, %v403_v29 }
 0x10c   :  { %v247_v32 = vadd.f32 %v895_v30, %v1142_v26  ;;  %v927_v33 = vpop.f32.mrf.mxu1 }
 0x10d   :  { %v415_v35 = vadd.f32 %v927_v33, %v1147_v28  ;;  %v238_v36 = vpop.f32.mrf.mxu0 }
 0x10e   :  { %v758_v38 = vpack.c.bf16 %v247_v32, %v244_v31  ;;  %v239_v39 = vadd.f32 %v1142_v26, %v238_v36  ;;  %v406_v40 = vpop.f32.mrf.mxu1 }
 0x10f   :  { %v798_v42 = vpack.c.bf16 %v415_v35, %v412_v34  ;;  %v407_v43 = vadd.f32 %v1147_v28, %v406_v40  ;;  %v898_v44 = vpop.f32.mrf.mxu0 }
 0x110   :  { %830 = vst [vmem:[#allocation8 + $0x8] sm:$0xff] %v758_v38   ;;  %v753_v45 = vpack.c.bf16 %v239_v39, %v236_v37  ;;  %v930_v46 = vpop.f32.mrf.mxu1  ;;  %v260_v51 = vadd.f32 %v898_v44, %v1142_v26 }
 0x111   :  { %837 = vst [vmem:[#allocation9 + $0x8] sm:$0xff] %v798_v42   ;;  %v793_v47 = vpack.c.bf16 %v407_v43, %v404_v41  ;;  %v251_v48 = vpop.f32.mrf.mxu0  ;;  %v428_v54 = vadd.f32 %v930_v46, %v1147_v28 }
 0x112   :  { %754 = vst [vmem:[#allocation8] sm:$0xff] %v753_v45   ;;  %v419_v49 = vpop.f32.mrf.mxu1  ;;  %v252_v57 = vadd.f32 %v1142_v26, %v251_v48 }
 0x113   :  { %794 = vst [vmem:[#allocation9] sm:$0xff] %v793_v47   ;;  %v899_v50 = vpop.f32.mrf.mxu0  ;;  %v420_v61 = vadd.f32 %v1147_v28, %v419_v49 }
 0x114   :  { %v263_v52 = vadd.f32 %v899_v50, %v1142_v26  ;;  %v931_v53 = vpop.f32.mrf.mxu1 }
 0x115   :  { %v431_v55 = vadd.f32 %v931_v53, %v1147_v28  ;;  %v254_v56 = vpop.f32.mrf.mxu0 }
 0x116   :  { %v768_v58 = vpack.c.bf16 %v263_v52, %v260_v51  ;;  %v255_v59 = vadd.f32 %v1142_v26, %v254_v56  ;;  %v422_v60 = vpop.f32.mrf.mxu1 }
 0x117   :  { %v808_v62 = vpack.c.bf16 %v431_v55, %v428_v54  ;;  %v423_v63 = vadd.f32 %v1147_v28, %v422_v60  ;;  %v902_v0 = vpop.f32.mrf.mxu0 }
 0x118   :  { %832 = vst [vmem:[#allocation8 + $0x18] sm:$0xff] %v768_v58   ;;  %v763_v1 = vpack.c.bf16 %v255_v59, %v252_v57  ;;  %v934_v2 = vpop.f32.mrf.mxu1  ;;  %v276_v7 = vadd.f32 %v902_v0, %v1142_v26 }
 0x119   :  { %839 = vst [vmem:[#allocation9 + $0x18] sm:$0xff] %v808_v62   ;;  %v803_v3 = vpack.c.bf16 %v423_v63, %v420_v61  ;;  %v267_v4 = vpop.f32.mrf.mxu0  ;;  %v444_v10 = vadd.f32 %v934_v2, %v1147_v28 }
 0x11a   :  { %831 = vst [vmem:[#allocation8 + $0x10] sm:$0xff] %v763_v1   ;;  %v435_v5 = vpop.f32.mrf.mxu1  ;;  %v268_v13 = vadd.f32 %v1142_v26, %v267_v4 }
 0x11b   :  { %838 = vst [vmem:[#allocation9 + $0x10] sm:$0xff] %v803_v3   ;;  %v903_v6 = vpop.f32.mrf.mxu0  ;;  %v436_v17 = vadd.f32 %v1147_v28, %v435_v5 }
 0x11c   :  { %v279_v8 = vadd.f32 %v903_v6, %v1142_v26  ;;  %v935_v9 = vpop.f32.mrf.mxu1 }
 0x11d   :  { %v447_v11 = vadd.f32 %v935_v9, %v1147_v28  ;;  %v270_v12 = vpop.f32.mrf.mxu0 }
 0x11e   :  { %v778_v14 = vpack.c.bf16 %v279_v8, %v276_v7  ;;  %v271_v15 = vadd.f32 %v1142_v26, %v270_v12  ;;  %v438_v16 = vpop.f32.mrf.mxu1 }
 0x11f   :  { %v818_v18 = vpack.c.bf16 %v447_v11, %v444_v10  ;;  %v439_v19 = vadd.f32 %v1147_v28, %v438_v16  ;;  %v906_v20 = vpop.f32.mrf.mxu0 }
 0x120   :  { %834 = vst [vmem:[#allocation8 + $0x28] sm:$0xff] %v778_v14   ;;  %v773_v21 = vpack.c.bf16 %v271_v15, %v268_v13  ;;  %v938_v22 = vpop.f32.mrf.mxu1  ;;  %v292_v29 = vadd.f32 %v906_v20, %v1142_v26 }
 0x121   :  { %841 = vst [vmem:[#allocation9 + $0x28] sm:$0xff] %v818_v18   ;;  %v813_v23 = vpack.c.bf16 %v439_v19, %v436_v17  ;;  %v283_v24 = vpop.f32.mrf.mxu0  ;;  %v460_v32 = vadd.f32 %v938_v22, %v1147_v28 }
 0x122   :  { %833 = vst [vmem:[#allocation8 + $0x20] sm:$0xff] %v773_v21   ;;  %v451_v25 = vpop.f32.mrf.mxu1  ;;  %v284_v35 = vadd.f32 %v1142_v26, %v283_v24 }
 0x123   :  { %840 = vst [vmem:[#allocation9 + $0x20] sm:$0xff] %v813_v23   ;;  %v907_v27 = vpop.f32.mrf.mxu0  ;;  %v452_v39 = vadd.f32 %v1147_v28, %v451_v25 }
 0x124   :  { %v295_v30 = vadd.f32 %v907_v27, %v1142_v26  ;;  %v939_v31 = vpop.f32.mrf.mxu1 }
 0x125   :  { %v463_v33 = vadd.f32 %v939_v31, %v1147_v28  ;;  %v286_v34 = vpop.f32.mrf.mxu0 }
 0x126   :  { %v788_v36 = vpack.c.bf16 %v295_v30, %v292_v29  ;;  %v287_v37 = vadd.f32 %v1142_v26, %v286_v34  ;;  %v454_v38 = vpop.f32.mrf.mxu1 }
 0x127   :  { %v828_v40 = vpack.c.bf16 %v463_v33, %v460_v32  ;;  %v455_v41 = vadd.f32 %v1147_v28, %v454_v38 }
 0x128   :  { %836 = vst [vmem:[#allocation8 + $0x38] sm:$0xff] %v788_v36   ;;  %v783_v42 = vpack.c.bf16 %v287_v37, %v284_v35 }
 0x129   :  { %843 = vst [vmem:[#allocation9 + $0x38] sm:$0xff] %v828_v40   ;;  %v823_v43 = vpack.c.bf16 %v455_v41, %v452_v39 }
 0x12a   :  { %835 = vst [vmem:[#allocation8 + $0x30] sm:$0xff] %v783_v42  }
 0x12b   :  { %842 = vst [vmem:[#allocation9 + $0x30] sm:$0xff] %v823_v43  }
 0x12c   :  { %1042 = shalt.err (!%p1039_p5)
}
 0x12d   :  { %637 = dma.vmem_to_hbm [thread:$0]  %s632_s4, 1024, %s1198_s5, [#allocation4], %s1081_s26, %s1081_s26, %s1082_s27  }
 0x12e   :  { %s1051_s20 = scalar_lea.vmem %s644_s16, 1024  ;;  %p1056_p7 = scmp.lt.s32.totalorder %s644_s16, %s644_s16 }
 0x12f   :  { %p1052_p6 = scmp.ne.s32.totalorder %s644_s16, %s1051_s20  ;;  %p1057_p8 = scmp.lt.s32.totalorder %s1051_s20, %s1051_s20 }
 0x131   :  { %p1058_p9 = por %p1057_p8, %p1056_p7 }
 0x133   :  { %p1059_p10 = pnand %p1058_p9, %p1052_p6 }
 0x135   :  { %1062 = shalt.err (!%p1059_p10)
}
 0x136   :  { %649 = dma.vmem_to_hbm [thread:$0]  %s644_s16, 1024, %s1199_s6, [#allocation10], %s1081_s26, %s1081_s26, %s1082_s27  }
 0x137   :  { %1075 = dma.done.wait [#allocation4], 1024  }
 0x138   :  { %1076 = vsyncadd [#allocation4], 4294966272 }
 0x139   :  { %1077 = dma.done.wait [#allocation10], 1024  }
 0x13a   :  { %1078 = vsyncadd [#allocation10], 4294966272 }
 0x13b   :  { %656 = vsyncpa [#allocation3], 1 }
 0x13c   :  { %657 = vsyncpa [#allocation6], 1 }
 0x13d   :  { %658 = vsyncpa [#allocation4], 1 }
 0x13e   :  { %659 = vsyncpa [#allocation10], 1 }

</bundles_post_ra>
